<compile_context>
chip_gen: v6e
topology: v6e:2x2x1
jax: 0.10.0
libtpu: 0.0.40
codegen_flags: <defaults>
</compile_context>

<pallas_src>
import numpy as np
import jax
import jax.numpy as jnp
from jax.experimental import pallas as pl
from jax.experimental.pallas import tpu as pltpu

TILE_MAX = 16384            # max pixels per grid step (VMEM headroom incl. v7x 64 MiB)

# ---- packed-parameter layout: columns of the (32, 128) f32 buffer --------------------
_W1 = (0, 3)                # (32, 3)
_W2 = (3, 35)               # (32, 32)
_W3 = (35, 67)              # (32, 32)
_W4 = (67, 99)              # (1, 32), stored in row 0
_B1, _B2, _B3, _B4 = 99, 100, 101, 102


# ------------------------------------ kernel ------------------------------------------
def _autoencoder_kernel(x_ref, p_ref, o_ref):
    """x_ref: (3, TP) channel-major pixels; p_ref: (32, 128) packed params; o_ref: (1, TP)."""
    h = x_ref[...]                                   # (3, TP)
    w1 = p_ref[:, _W1[0]:_W1[1]]                     # (32, 3)
    w2 = p_ref[:, _W2[0]:_W2[1]]                     # (32, 32)
    w3 = p_ref[:, _W3[0]:_W3[1]]                     # (32, 32)
    w4 = p_ref[0:1, _W4[0]:_W4[1]]                   # (1, 32)
    b1 = p_ref[:, _B1:_B1 + 1]                       # (32, 1) -> broadcast over lanes
    b2 = p_ref[:, _B2:_B2 + 1]
    b3 = p_ref[:, _B3:_B3 + 1]
    b4 = p_ref[0:1, _B4:_B4 + 1]                     # (1, 1)

    # four 1x1 convs (per-pixel matmuls, W @ h with pixels on the lane axis) + tanh
    h = jnp.tanh(jnp.dot(w1, h, preferred_element_type=jnp.float32) + b1)
    h = jnp.tanh(jnp.dot(w2, h, preferred_element_type=jnp.float32) + b2)
    h = jnp.tanh(jnp.dot(w3, h, preferred_element_type=jnp.float32) + b3)
    o_ref[...] = jnp.tanh(jnp.dot(w4, h, preferred_element_type=jnp.float32) + b4)


# ---------------------------------- parameters ----------------------------------------
def l2normalize(v, eps=1e-12):
    return v / (jnp.linalg.norm(v) + eps)


def make_autoencoder_params(key, alpha=2.3, power_iterations=1):
    """SpectralNorm(Conv2d 1x1) x4 -> [(W (Cout, Cin) f32, b (Cout,) f32)] x4."""
    sizes = [(3, 32), (32, 32), (32, 32), (32, 1)]
    params = []
    for cin, cout in sizes:
        key, kw, kb, ku = jax.random.split(key, 4)
        bound = float(1.0 / np.sqrt(cin))            # Conv2d default init, kernel_size=1
        w_bar = jax.random.uniform(kw, (cout, cin), jnp.float32, -bound, bound)
        bias = jax.random.uniform(kb, (cout,), jnp.float32, -bound, bound)
        u = l2normalize(jax.random.normal(ku, (cout,), jnp.float32))
        v = None
        for _ in range(power_iterations):
            v = l2normalize(w_bar.T @ u)
            u = l2normalize(w_bar @ v)
        sigma = u @ (w_bar @ v)
        params.append(((alpha * w_bar / sigma).astype(jnp.float32), bias))
    return params


def pack_params(params):
    """Pack the 4 (W, b) pairs into one (32, 128) f32 buffer (single resident VMEM tile)."""
    (w1, b1), (w2, b2), (w3, b3), (w4, b4) = params
    buf = jnp.zeros((32, 128), jnp.float32)
    buf = buf.at[:, _W1[0]:_W1[1]].set(w1)
    buf = buf.at[:, _W2[0]:_W2[1]].set(w2)
    buf = buf.at[:, _W3[0]:_W3[1]].set(w3)
    buf = buf.at[0:1, _W4[0]:_W4[1]].set(w4)
    buf = buf.at[:, _B1].set(b1)
    buf = buf.at[:, _B2].set(b2)
    buf = buf.at[:, _B3].set(b3)
    buf = buf.at[0, _B4].set(b4[0])
    return buf


# ------------------------------------ wrapper -----------------------------------------
def _choose_tile_p(P):
    """128-aligned pixel tile: large (amortize ~0.35us/step overhead), capped for VMEM,
    and split into >=2 tiles whenever possible so v7x's two TensorCores both get work."""
    p128 = ((P + 127) // 128) * 128
    if p128 <= 128:
        return 128
    if p128 <= 2 * TILE_MAX:
        return ((p128 + 255) // 256) * 128           # ~half of P, 128-aligned
    return TILE_MAX


def autoencoder_forward(x, packed_params):
    """x: (B, 3, H, W) NCHW float. Returns (B, 1, H, W) float32 (same as the PyTorch module)."""
    B, C, H, W = x.shape
    assert C == 3
    P = B * H * W
    tile_p = _choose_tile_p(P)
    n_tiles = pl.cdiv(P, tile_p)
    p_pad = n_tiles * tile_p

    # channel-major, lane-dense view: pixels on the 128-lane axis
    xcm = jnp.moveaxis(x, 1, 0).reshape(C, P).astype(jnp.float32)
    if p_pad != P:
        xcm = jnp.pad(xcm, ((0, 0), (0, p_pad - P)))

    out_flat = pl.pallas_call(
        _autoencoder_kernel,
        out_shape=jax.ShapeDtypeStruct((1, p_pad), jnp.float32),
        grid_spec=pltpu.PrefetchScalarGridSpec(
            num_scalar_prefetch=0,
            grid=(n_tiles,),
            in_specs=[pl.BlockSpec((C, tile_p), lambda i: (0, i)),
                      pl.BlockSpec((32, 128), lambda i: (0, 0))],   # params: resident
            out_specs=pl.BlockSpec((1, tile_p), lambda i: (0, i))),
        compiler_params=pltpu.CompilerParams(
            dimension_semantics=("parallel",),
            vmem_limit_bytes=32 * 1024 * 1024),
    )(xcm, packed_params)

    out = out_flat[:, :P].reshape(1, B, H, W)
    return jnp.moveaxis(out, 0, 1)                    # (B, 1, H, W)


# ------------------------------- pure-JAX reference -----------------------------------
def autoencoder_ref(x, params):
    B, C, H, W = x.shape
    h = jnp.moveaxis(x, 1, 0).reshape(C, -1).astype(jnp.float32)
    for w, b in params:
        h = jnp.tanh(w @ h + b[:, None])
    return jnp.moveaxis(h.reshape(1, B, H, W), 0, 1)


if __name__ == "__main__":
    key = jax.random.PRNGKey(0)
    kx, kp = jax.random.split(key)
    B, H, W = 2, 16, 16
    x = jax.random.uniform(kx, (B, 3, H, W), jnp.float32, -1.0, 1.0)   # NCHW, in_channels=3

    params = make_autoencoder_params(kp, alpha=2.3)   # Autoencoder passes alpha=2.3
    packed = pack_params(params)

    out = autoencoder_forward(x, packed)
    jax.block_until_ready(out)

    assert out.shape == (B, 1, H, W) and out.dtype == jnp.float32
    assert bool(jnp.all(jnp.isfinite(out)))
    assert bool(jnp.all(jnp.abs(out) <= 1.0))         # tanh output range

    ref = autoencoder_ref(x, params)
    assert bool(jnp.allclose(out, ref, atol=5e-2, rtol=0.0))
    print("KERNEL_OK")
</pallas_src>

<mosaic_0001>
module attributes {stable_mosaic.version = 11 : i64} {
  func.func @_autoencoder_kernel(%arg0: i32, %arg1: memref<3x256xf32, #tpu.memory_space<vmem>>, %arg2: memref<32x128xf32, #tpu.memory_space<vmem>>, %arg3: memref<1x256xf32, #tpu.memory_space<vmem>>) attributes {dimension_semantics = [#tpu.dimension_semantics<parallel>], iteration_bounds = array<i64: 2>, scalar_prefetch = 0 : i64, scratch_operands = 0 : i64, tpu.core_type = #tpu.core_type<tc>, window_params = [{transform_indices = @transform_0, window_bounds = array<i64: 3, 256>}, {pipeline_mode = #tpu.pipeline_mode<synchronous>, transform_indices = @transform_1, window_bounds = array<i64: 32, 128>}, {transform_indices = @transform_2, window_bounds = array<i64: 1, 256>}]} {
    %c0 = arith.constant 0 : index
    %c0_0 = arith.constant 0 : index
    %0 = vector.load %arg1[%c0, %c0_0] : memref<3x256xf32, #tpu.memory_space<vmem>>, vector<3x256xf32>
    %c0_1 = arith.constant 0 : index
    %c0_2 = arith.constant 0 : index
    %1 = vector.load %arg2[%c0_1, %c0_2] : memref<32x128xf32, #tpu.memory_space<vmem>>, vector<32x3xf32>
    %c0_3 = arith.constant 0 : index
    %c3 = arith.constant 3 : index
    %2 = vector.load %arg2[%c0_3, %c3] : memref<32x128xf32, #tpu.memory_space<vmem>>, vector<32x32xf32>
    %c0_4 = arith.constant 0 : index
    %c35 = arith.constant 35 : index
    %3 = vector.load %arg2[%c0_4, %c35] : memref<32x128xf32, #tpu.memory_space<vmem>>, vector<32x32xf32>
    %c0_5 = arith.constant 0 : index
    %c67 = arith.constant 67 : index
    %4 = vector.load %arg2[%c0_5, %c67] : memref<32x128xf32, #tpu.memory_space<vmem>>, vector<1x32xf32>
    %c0_6 = arith.constant 0 : index
    %c99 = arith.constant 99 : index
    %5 = vector.load %arg2[%c0_6, %c99] : memref<32x128xf32, #tpu.memory_space<vmem>>, vector<32x1xf32>
    %c0_7 = arith.constant 0 : index
    %c100 = arith.constant 100 : index
    %6 = vector.load %arg2[%c0_7, %c100] : memref<32x128xf32, #tpu.memory_space<vmem>>, vector<32x1xf32>
    %c0_8 = arith.constant 0 : index
    %c101 = arith.constant 101 : index
    %7 = vector.load %arg2[%c0_8, %c101] : memref<32x128xf32, #tpu.memory_space<vmem>>, vector<32x1xf32>
    %c0_9 = arith.constant 0 : index
    %c102 = arith.constant 102 : index
    %8 = vector.load %arg2[%c0_9, %c102] : memref<32x128xf32, #tpu.memory_space<vmem>>, vector<1x1xf32>
    %cst = arith.constant dense<0.000000e+00> : vector<32x256xf32>
    %9 = tpu.matmul %1, %0, %cst {dimension_numbers = #tpu.dot_dimension_numbers<[1], [0], [0], [1], [0, 0, 1, 1], [], []>} : vector<32x3xf32>, vector<3x256xf32>, vector<32x256xf32> -> vector<32x256xf32>
    %10 = vector.broadcast %5 : vector<32x1xf32> to vector<32x256xf32>
    %11 = arith.addf %9, %10 : vector<32x256xf32>
    %12 = math.tanh %11 : vector<32x256xf32>
    %cst_10 = arith.constant dense<0.000000e+00> : vector<32x256xf32>
    %13 = tpu.matmul %2, %12, %cst_10 {dimension_numbers = #tpu.dot_dimension_numbers<[1], [0], [0], [1], [0, 0, 1, 1], [], []>} : vector<32x32xf32>, vector<32x256xf32>, vector<32x256xf32> -> vector<32x256xf32>
    %14 = vector.broadcast %6 : vector<32x1xf32> to vector<32x256xf32>
    %15 = arith.addf %13, %14 : vector<32x256xf32>
    %16 = math.tanh %15 : vector<32x256xf32>
    %cst_11 = arith.constant dense<0.000000e+00> : vector<32x256xf32>
    %17 = tpu.matmul %3, %16, %cst_11 {dimension_numbers = #tpu.dot_dimension_numbers<[1], [0], [0], [1], [0, 0, 1, 1], [], []>} : vector<32x32xf32>, vector<32x256xf32>, vector<32x256xf32> -> vector<32x256xf32>
    %18 = vector.broadcast %7 : vector<32x1xf32> to vector<32x256xf32>
    %19 = arith.addf %17, %18 : vector<32x256xf32>
    %20 = math.tanh %19 : vector<32x256xf32>
    %cst_12 = arith.constant dense<0.000000e+00> : vector<1x256xf32>
    %21 = tpu.matmul %4, %20, %cst_12 {dimension_numbers = #tpu.dot_dimension_numbers<[1], [0], [0], [1], [0, 0, 1, 1], [], []>} : vector<1x32xf32>, vector<32x256xf32>, vector<1x256xf32> -> vector<1x256xf32>
    %22 = vector.broadcast %8 : vector<1x1xf32> to vector<1x256xf32>
    %23 = arith.addf %21, %22 : vector<1x256xf32>
    %24 = math.tanh %23 : vector<1x256xf32>
    %c0_13 = arith.constant 0 : index
    %c0_14 = arith.constant 0 : index
    %25 = vector.load %arg3[%c0_13, %c0_14] : memref<1x256xf32, #tpu.memory_space<vmem>>, vector<1x256xf32>
    tpu.vector_store %arg3[%c0_13, %c0_14], %24 {strides = array<i32>} : memref<1x256xf32, #tpu.memory_space<vmem>>, vector<1x256xf32>,
    return
  }
  func.func @transform_0(%arg0: i32) -> (i32, i32) {
    %c0_i32 = arith.constant 0 : i32
    %c0_i32_0 = arith.constant 0 : i32
    return %c0_i32, %arg0 : i32, i32
  }
  func.func @transform_1(%arg0: i32) -> (i32, i32) {
    %c0_i32 = arith.constant 0 : i32
    %c0_i32_0 = arith.constant 0 : i32
    %c0_i32_1 = arith.constant 0 : i32
    return %c0_i32, %c0_i32_0 : i32, i32
  }
  func.func @transform_2(%arg0: i32) -> (i32, i32) {
    %c0_i32 = arith.constant 0 : i32
    %c0_i32_0 = arith.constant 0 : i32
    return %c0_i32, %arg0 : i32, i32
  }
}

</mosaic_0001>

<bundles_post_ra>
// kernel: tpu_custom_call.1
= control target key start
LH: loop header
LB: loop body
LE: loop exit
PB: predicated region body
PF: predicated region fallthrough
CT: control target
= control target key end

     0   :  { %7 = vsyncpa [#allocation3], 0  ;;  %s1301_s0 = inlined_call_operand.hbm [shape: f32[3,512], index: 0, kind: input, shape index: {}]   ;;  %s1302_s1 = inlined_call_operand.hbm [shape: f32[32,128], index: 1, kind: input, shape index: {}]   ;;  %s1303_s2 = inlined_call_operand.hbm [shape: f32[1,512], index: 2, kind: output, shape index: {}]  }
   0x1   :  { %9 = vsyncpa [#allocation3 + $0x1], 0 }
   0x2   :  { %10 = vsyncpa [#allocation6], 0 }
   0x3   :  { %11 = vsyncpa [#allocation4], 0 }
   0x4   :  { %13 = vsyncpa [#allocation4 + $0x1], 0  ;;  %s1092_s9 = smov 0   ;;  %s1094_s10 = smov 0  }
   0x5   :  { %s1096_s11 = smov 0   ;;  %s1098_s12 = smov 0  }
   0x6 LB: > { %s1113_s13 = sadd.s32 4294967295, %s1061_s12   ;;  %s775_s14 = sadd.s32 4294967294, %s1061_s12   ;;  %s1061_s12 = sphi %s1098_s12, %s1325_s12   ;;  %s1057_s11 = sphi %s1096_s11, %s1324_s11   ;;  %s1053_s10 = sphi %s1094_s10, %s1323_s10   ;;  %s1049_s9 = sphi %s1092_s9, %s1322_s9  }
   0x7   : > { %p39_p0 = scmp.ne.s32.totalorder %s1053_s10, %s1049_s9  ;;  %p1304_p1 = scmp.eq.s32.totalorder %s1113_s13, 0 }
   0x8   : > { %p90_p3 = scmp.eq.s32.totalorder %s775_s14, 1  ;;  %p776_p5 = scmp.ge.s32.totalorder %s1061_s12, 1 }
   0x9   : > { %p1122_p4 = por %p1304_p1, %p39_p0  ;;  %p97_p7 = scmp.lt.s32.totalorder %s1061_s12, 3 }
   0xa   : > { %p1127_p6 = por %p90_p3, %p39_p0  ;;  %s1063_s18 = smov [#allocation5]  }
   0xb   : > { %s1308_s15 = scalar_select %p1122_p4, 1, 0 }
   0xc   : > { %s1309_s16 = scalar_select %p1127_p6, 1, 0 }
   0xd   : > { %p1132_p8 = pnand %p776_p5, %p97_p7  ;;  %s109_s19 = sshll.u32 %s1063_s18, 4  ;;  %s110_s19 = int_to_ptr.vmem [resolvable:$true] %s109_s19 }
   0xe   : > { %s1146_s21 = sadd.s32 1, %s1061_s12   ;;  %s26_s22 = sadd.s32 1, %s1057_s11 }
   0xf   : > { %s1310_s17 = scalar_select %p1132_p8, 1, 0 }
  0x10   : > { %p818_p9 = pneg %p1132_p8  ;;  %s23_s23 = ssub.s32 %s1061_s12, %s1146_s21 }
  0x11   : > { %s950_s24 = scalar_lea.vmem %s110_s19, 512  ;;  %p958_p5 = scmp.lt.s32.totalorder %s110_s19, %s110_s19 }
  0x12   : > { %p1141_p11 = pnand %p818_p9, %p1304_p1  ;;  %p951_p13 = scmp.ne.s32.totalorder %s110_s19, %s950_s24 }
  0x13   : > { %p959_p7 = scmp.lt.s32.totalorder %s950_s24, %s950_s24 }
  0x14   : > { %p941_p12 = pneg %p1141_p11 }
  0x15   : > { %p960_p10 = por %p959_p7, %p958_p5 }
  0x16   : > { %p953_p0 = pnand %p951_p13, %p941_p12 }
  0x18   : > { %p954_p3 = pneg %p953_p0 }
  0x1a   : > { %p961_p2 = pnand %p960_p10, %p954_p3 }
  0x1c   : > { %964 = shalt.err (!%p961_p2)
}
  0x1d   : > { %s1064_s25 = smov 128   ;;  %s1065_s26 = smov 8  }
  0x1e   : > { %821 = dma.hbm_to_vmem [thread:$0]  (!%p1141_p11), %s1302_s1, 512, %s110_s19, [#allocation6], %s1064_s25, %s1064_s25, %s1065_s26  }
  0x1f   : > { %p24_p9 = scmp.eq.s32.totalorder %s23_s23, 0  ;;  %p33_p12 = scmp.ne.s32.totalorder %s1057_s11, %s1053_s10 }
  0x20   : > { %p34_p10 = scmp.eq.s32.totalorder %s1061_s12, 0  ;;  %p831_p2 = scmp.lt.s32.totalorder %s1061_s12, 2 }
  0x21   : > { %s1163_s29 = scalar_select %p24_p9, %s1057_s11, %s26_s22  }
  0x22   : > { %p35_p13 = por %p34_p10, %p33_p12  ;;  %p1312_p0 = scmp.eq.s32.totalorder %s1113_s13, 1 }
  0x23   : > { %s123_s3 = sand.u32 1, %s1057_s11   ;;  %s806_s4 = sshll.u32 %s1061_s12, 7 }
  0x24   : > { %p1167_p3 = por %p1312_p0, %p33_p12  ;;  %s779_s5 = sshll.u32 %s123_s3, 3 }
  0x25   : > { %s1176_s8 = scalar_lea.hbm %s1301_s0, %s806_s4  ;;  %s127_s14 = scalar_lea.vmem [#allocation2], %s779_s5 }
  0x26   : > { %s1313_s30 = scalar_select %p1167_p3, 1, 0 }
  0x27   : > { %s135_s18 = sshll.u32 %s127_s14, 4  ;;  %p1178_p11 = pnand %p831_p2, %p35_p13  ;;  %s136_s18 = int_to_ptr.vmem [resolvable:$true] %s135_s18 }
  0x28   : > { %s124_s20 = scalar_lea.sflag [#allocation3], %s123_s3  ;;  %s965_s22 = scalar_lea.hbm %s1176_s8, 128 }
  0x29   : > { %p966_p5 = scmp.ne.s32.totalorder %s1176_s8, %s965_s22  ;;  %p967_p7 = pneg %p1178_p11 }
  0x2a   : > { %s970_s25 = scalar_lea.hbm %s1301_s0, 256  ;;  %p971_p10 = scmp.lt.s32.totalorder %s1176_s8, %s1301_s0 }
  0x2b   : > { %p968_p9 = pnand %p967_p7, %p966_p5  ;;  %p972_p2 = scmp.lt.s32.totalorder %s970_s25, %s965_s22 }
  0x2d   : > { %p969_p12 = pneg %p968_p9  ;;  %p973_p13 = por %p972_p2, %p971_p10 }
  0x2f   : > { %p974_p0 = pnand %p973_p13, %p969_p12 }
  0x31   : > { %977 = shalt.err (!%p974_p0)
}
  0x32   : > { %s978_s28 = scalar_lea.vmem %s136_s18, 128  ;;  %s1066_s3 = smov [#allocation2]  }
  0x33   : > { %p979_p1 = scmp.ne.s32.totalorder %s136_s18, %s978_s28  ;;  %s983_s4 = sshll.u32 %s1066_s3, 4  ;;  %s984_s4 = int_to_ptr.vmem [resolvable:$false] %s983_s4 }
  0x34   : > { %s985_s5 = scalar_lea.vmem %s984_s4, 256  ;;  %p986_p5 = scmp.lt.s32.totalorder %s136_s18, %s984_s4 }
  0x35   : > { %p981_p6 = pnand %p979_p1, %p967_p7  ;;  %p987_p9 = scmp.lt.s32.totalorder %s985_s5, %s978_s28 }
  0x37   : > { %p982_p3 = pneg %p981_p6  ;;  %p988_p4 = por %p987_p9, %p986_p5 }
  0x39   : > { %p989_p8 = pnand %p988_p4, %p982_p3 }
  0x3b   : > { %992 = shalt.err (!%p989_p8)
}
  0x3c   : > { %825 = dma.hbm_to_vmem [thread:$0]  (!%p1178_p11), %s1176_s8, 128, %s136_s18, %s124_s20  }
  0x3d   : > { %p1315_p12 = scmp.ne.s32.totalorder %s1310_s17, 0 }
  0x3e   : > { %s1199_s6 = sand.u32 (!%p1315_p12), 1, %s1053_s10   ;;  %p1316_p1 = scmp.ne.s32.totalorder (!%p1315_p12), %s1308_s15, 0 }
  0x3f   : > { %144 = sbr.rel (%p1315_p12) target bundleno = 993 (0x3e1), region = 28  ;;  %s783_s7 = sshll.u32 (!%p1315_p12), %s1199_s6, 3 }
  0x40   : > { %s147_s14 = scalar_lea.sflag (!%p1315_p12), [#allocation3], %s1199_s6  ;;  %s150_s22 = scalar_lea.vmem (!%p1315_p12), [#allocation2], %s783_s7 }
  0x44   : > { %1036 = dma.done.wait (%p1316_p1), %s147_s14, 128  }
  0x45   : > { %1038 = vsyncadd (%p1316_p1), %s147_s14, 4294967168  ;;  %p1317_p4 = scmp.eq.s32.totalorder %s1113_s13, 0 }
  0x47   : > { %1040 = dma.done.wait (%p1317_p4), [#allocation6], 512   ;;  %p1318_p6 = pmov %p1317_p4 }
  0x48   : > { %v1067_v0 = vmov 0.0   ;;  %v1068_v1 = vmov 99   ;;  %v177_v2 = vld [vmem:[%s150_s22] sm:$0x77]  ;;  %vm214_vm0 = vcmask 1042432   ;;  %v1215_v5 = vld [vmem:[#allocation5 + $0x8] sm:$0xff] }
  0x49   : > { %1042 = vsyncadd (%p1318_p6), [#allocation6], 4294966784  ;;  %295 = vmatprep.mubr.f32.mxu1 %v1067_v0  ;;  %283 = vmatprep.mubr.f32.mxu0 %v1067_v0  ;;  %v204_v3 = vcombine.high %v177_v2, %v177_v2  ;;  %v1213_v4 = vld [vmem:[#allocation5 + $0x18] sm:$0xff]  ;;  %v1217_v6 = vld [vmem:[#allocation5 + $0x10] sm:$0xff]  ;;  %vm205_vm1 = vcmask 23552   ;;  %s1069_s15 = smov 125  }
  0x4a   : > { %878 = vset.pattern.permute.xlu0 %v1068_v1  ;;  %879 = vset.pattern.permute.xlu1 %v1068_v1  ;;  %v1219_v7 = vld [vmem:[#allocation5] sm:$0xff]  ;;  %v1070_v8 = vmov 100   ;;  %s1071_s17 = smov 93   ;;  %vm340_vm2 = vcmask 261120   ;;  %v1072_v41 = vmov 101   ;;  %s1073_s8 = smov 61  }
  0x4b   : > { %200 = vperm.xlu0 %878, %v1213_v4   ;;  %190 = vperm.xlu1 %879, %v1215_v5   ;;  %v182_v42 = vld [vmem:[#allocation5] sm:$0x1]  ;;  %s785_s18 = sshll.u32 %s1199_s6, 1  ;;  %s807_s19 = sshll.u32 %s1113_s13, 5 }
  0x4c   : > { %808 = vmatprep.subr.msk.mxu1 %vm214_vm0, %v204_v3  ;;  %786 = vmatprep.subr.msk.mxu0 %vm214_vm0, %v204_v3  ;;  %s174_s20 = scalar_lea.vmem [#allocation7], %s785_s18  ;;  %s693_s26 = scalar_lea.hbm %s1303_s2, %s807_s19 }
  0x4d   : > { %809 = vmatpush1.msk.msra.mxu1 %vm214_vm0, %v177_v2  ;;  %787 = vmatpush1.msk.msra.mxu0 %vm214_vm0, %v177_v2  ;;  %s695_s23 = sshll.u32 %s174_s20, 4  ;;  %s681_s27 = scalar_lea.sflag [#allocation4], %s1199_s6  ;;  %s696_s23 = int_to_ptr.vmem [resolvable:$true] %s695_s23 }
  0x4e   : > { %790 = vmatmul.mubr.msk.f32.vlgmr.msra.gmra.mxu1 %vm205_vm1, %v1217_v6  ;;  %788 = vmatmul.mubr.msk.f32.vlgmr.msra.gmra.mxu0 %vm205_vm1, %v1219_v7  ;;  %s993_s28 = scalar_lea.vmem %s696_s23, 32  ;;  %p1319_p3 = scmp.ne.s32.totalorder %s1313_s30, 0 }
  0x4f   : > { %301 = vmatprep.mubr.f32.mxu1 %v1067_v0  ;;  %289 = vmatprep.mubr.f32.mxu0 %v1067_v0  ;;  %p994_p8 = scmp.ne.s32.totalorder %s696_s23, %s993_s28  ;;  %s1076_s3 = smov [#allocation7]  }
  0x50   : > { %195 = vperm.xlu0 %878, %v1217_v6   ;;  %185 = vperm.xlu1 %879, %v1219_v7   ;;  %s997_s4 = sshll.u32 %s1076_s3, 4  ;;  %s998_s4 = int_to_ptr.vmem [resolvable:$false] %s997_s4 }
  0x51   : > { %p995_p11 = pnand %p994_p8, %p1319_p3  ;;  %s999_s13 = scalar_lea.vmem %s998_s4, 64 }
  0x52   : > { %791 = vmatmul.mubr.msk.f32.gmra.mxu1 %vm205_vm1, %v1213_v4  ;;  %789 = vmatmul.mubr.msk.f32.gmra.mxu0 %vm205_vm1, %v1215_v5  ;;  %p1000_p10 = scmp.lt.s32.totalorder %s696_s23, %s998_s4  ;;  %p1001_p2 = scmp.lt.s32.totalorder %s999_s13, %s993_s28 }
  0x53   : > { %413 = vmatprep.mubr.f32.mxu1 %v1067_v0  ;;  %542 = vmatprep.mubr.f32.mxu0 %v1067_v0  ;;  %p996_p7 = pneg %p995_p11 }
  0x54   : > { %332 = vrot.lane.b32.xlu0 %v1219_v7, %s1069_s15  ;;  %334 = vrot.lane.b32.xlu1 %v1215_v5, %s1069_s15  ;;  %p1002_p13 = por %p1001_p2, %p1000_p10 }
  0x55   : > { %880 = vset.pattern.permute.xlu0 %v1070_v8  ;;  %881 = vset.pattern.permute.xlu1 %v1070_v8 }
  0x56   : > { %p1003_p0 = pnand %p1002_p13, %p996_p7 }
  0x58   : > { %336 = vrot.lane.b32.xlu0 %v1217_v6, %s1069_s15  ;;  %338 = vrot.lane.b32.xlu1 %v1213_v4, %s1069_s15 }
  0x5c   : > { %329 = vperm.xlu0 %880, %v1213_v4   ;;  %325 = vperm.xlu1 %881, %v1217_v6  }
  0x60   : > { %317 = vperm.xlu0 %880, %v1219_v7   ;;  %321 = vperm.xlu1 %881, %v1215_v5  }
  0x64   : > { %462 = vrot.lane.b32.xlu1 %v1219_v7, %s1071_s17  ;;  %464 = vrot.lane.b32.xlu0 %v1215_v5, %s1071_s17 }
  0x65   : > { %882 = vset.pattern.permute.xlu1 %v1072_v41  ;;  %883 = vset.pattern.permute.xlu0 %v1072_v41 }
  0x68   : > { %466 = vrot.lane.b32.xlu1 %v1217_v6, %s1071_s17  ;;  %468 = vrot.lane.b32.xlu0 %v1213_v4, %s1071_s17 }
  0x6c   : > { %459 = vperm.xlu1 %882, %v1213_v4   ;;  %455 = vperm.xlu0 %883, %v1217_v6  }
  0x70   : > { %451 = vperm.xlu1 %882, %v1215_v5   ;;  %580 = vrot.lane.b32.xlu0 %v182_v42, %s1073_s8 }
  0x74   : > { %447 = vperm.xlu1 %882, %v1219_v7  }
  0xc6   : > { %v201_v9 = vpop.permute.xlu0 %200  ;;  %v191_v12 = vpop.permute.xlu1 %190 }
  0xcb   : > { %v196_v17 = vpop.permute.xlu0 %195  ;;  %v186_v24 = vpop.permute.xlu1 %185 }
  0xcf   : > { %v333_v36 = vpop.permute.xlu0 %332  ;;  %v335_v38 = vpop.permute.xlu1 %334 }
  0xd3   : > { %v337_v39 = vpop.permute.xlu0 %336  ;;  %v339_v40 = vpop.permute.xlu1 %338 }
  0xd7   : > { %v326_v48 = vpop.permute.xlu1 %325  ;;  %v330_v50 = vpop.permute.xlu0 %329 }
  0xdb   : > { %v322_v54 = vpop.permute.xlu1 %321  ;;  %v318_v58 = vpop.permute.xlu0 %317 }
  0xdf   : > { %v463_v7 = vpop.permute.xlu1 %462 }
 0x10e   : > { %v297_v10 = vpop.f32.mrf.mxu1  ;;  %v285_v11 = vpop.f32.mrf.mxu0 }
 0x10f   : > { %v298_v23 = vadd.f32 %v297_v10, %v196_v17  ;;  %v286_v28 = vadd.f32 %v285_v11, %v186_v24  ;;  %v467_v10 = vpop.permute.xlu1 %466 }
 0x110   : > { %v299_v13 = vpop.f32.mrf.mxu1  ;;  %v287_v14 = vpop.f32.mrf.mxu0 }
 0x111   : > { %v300_v21 = vadd.f32 %v299_v13, %v196_v17  ;;  %v288_v27 = vadd.f32 %v287_v14, %v186_v24 }
 0x112   : > { %v303_v15 = vpop.f32.mrf.mxu1  ;;  %v291_v16 = vpop.f32.mrf.mxu0 }
 0x113   : > { %v304_v18 = vadd.f32 %v303_v15, %v201_v9  ;;  %v292_v26 = vadd.f32 %v291_v16, %v191_v12  ;;  %v460_v16 = vpop.permute.xlu1 %459 }
 0x114   : > { %v305_v19 = vpop.f32.mrf.mxu1  ;;  %v293_v20 = vpop.f32.mrf.mxu0 }
 0x115   : > { %v306_v22 = vadd.f32 %v305_v19, %v201_v9  ;;  %v294_v25 = vadd.f32 %v293_v20, %v191_v12  ;;  %v465_v9 = vpop.permute.xlu0 %464  ;;  %v1074_v12 = vmov 102  }
 0x116   : > { %884 = vset.pattern.permute.xlu1 %v1074_v12  ;;  %885 = vset.pattern.permute.xlu0 %v1074_v12 }
 0x117   : > { %887 = vtanh.f32 %v306_v22  ;;  %577 = vperm.xlu1 %884, %v182_v42   ;;  %v452_v20 = vpop.permute.xlu1 %451 }
 0x118   : > { %889 = vtanh.f32 %v304_v18 }
 0x119   : > { %891 = vtanh.f32 %v300_v21  ;;  %v469_v11 = vpop.permute.xlu0 %468 }
 0x11a   : > { %893 = vtanh.f32 %v298_v23 }
 0x11b   : > { %895 = vtanh.f32 %v294_v25 }
 0x11c   : > { %897 = vtanh.f32 %v292_v26 }
 0x11d   : > { %899 = vtanh.f32 %v288_v27  ;;  %v456_v22 = vpop.permute.xlu0 %455  ;;  %v448_v27 = vpop.permute.xlu1 %447 }
 0x11e   : > { %901 = vtanh.f32 %v286_v28 }
 0x124   : > { %v888_v29 = vpop.eup %887 }
 0x125   : > { %v890_v30 = vpop.eup %889  ;;  %373 = vmatprep.subr.mxu1 %v888_v29 }
 0x126   : > { %v892_v31 = vpop.eup %891  ;;  %374 = vmatpush1.msra.mxu1 %v890_v30 }
 0x127   : > { %v894_v32 = vpop.eup %893  ;;  %375 = vmatprep.subr.mxu1 %v892_v31 }
 0x128   : > { %v896_v33 = vpop.eup %895  ;;  %376 = vmatpush1.msra.mxu1 %v894_v32 }
 0x129   : > { %v898_v34 = vpop.eup %897  ;;  %377 = vmatprep.subr.mxu1 %v896_v33 }
 0x12a   : > { %v900_v35 = vpop.eup %899  ;;  %378 = vmatpush1.msra.mxu1 %v898_v34 }
 0x12b   : > { %v902_v37 = vpop.eup %901  ;;  %379 = vmatprep.subr.mxu1 %v900_v35 }
 0x12c   : > { %380 = vmatpush1.msra.mxu1 %v902_v37 }
 0x12d   : > { %792 = vmatmul.mubr.msk.f32.vlgmr.msra.gmra.mxu1 %vm340_vm2, %v333_v36 }
 0x12e   : > { %419 = vmatprep.mubr.f32.mxu1 %v1067_v0 }
 0x131   : > { %793 = vmatmul.mubr.msk.f32.gmra.mxu1 %vm340_vm2, %v335_v38 }
 0x132   : > { %425 = vmatprep.mubr.f32.mxu1 %v1067_v0 }
 0x135   : > { %794 = vmatmul.mubr.msk.f32.gmra.mxu1 %vm340_vm2, %v337_v39  ;;  %v581_v39 = vpop.permute.xlu0 %580 }
 0x136   : > { %431 = vmatprep.mubr.f32.mxu1 %v1067_v0 }
 0x139   : > { %795 = vmatmul.mubr.msk.f32.gmra.mxu1 %vm340_vm2, %v339_v40 }
 0x13a   : > { %648 = vmatprep.mubr.f32.mxu1 %v1067_v0 }
 0x192   : > { %v578_v41 = vpop.permute.xlu1 %577 }
 0x1ed   : > { %v415_v43 = vpop.f32.mrf.mxu1 }
 0x1ee   : > { %v416_v62 = vadd.f32 %v415_v43, %v318_v58 }
 0x1ef   : > { %v417_v44 = vpop.f32.mrf.mxu1 }
 0x1f0   : > { %v418_v61 = vadd.f32 %v417_v44, %v318_v58 }
 0x1f1   : > { %v421_v45 = vpop.f32.mrf.mxu1 }
 0x1f2   : > { %v422_v60 = vadd.f32 %v421_v45, %v322_v54 }
 0x1f3   : > { %v423_v46 = vpop.f32.mrf.mxu1 }
 0x1f4   : > { %v424_v59 = vadd.f32 %v423_v46, %v322_v54  ;;  %v1075_v46 = vmov 1966171168  }
 0x1f5   : > { %v427_v47 = vpop.f32.mrf.mxu1 }
 0x1f6   : > { %v428_v57 = vadd.f32 %v427_v47, %v326_v48  ;;  %v661_v47 = vunpack.c.l.s4 %v1075_v46 }
 0x1f7   : > { %v429_v49 = vpop.f32.mrf.mxu1 }
 0x1f8   : > { %v430_v55 = vadd.f32 %v429_v49, %v326_v48  ;;  %v663_v48 = vlaneseq  ;;  %v662_v49 = vunpack.c.0.s8 %v661_v47 }
 0x1f9   : > { %v433_v51 = vpop.f32.mrf.mxu1 }
 0x1fa   : > { %v434_v52 = vadd.f32 %v433_v51, %v330_v50  ;;  %vm677_vm3 = vcmp.lt.s32.totalorder %v663_v48, 256 }
 0x1fb   : > { %v435_v53 = vpop.f32.mrf.mxu1 }
 0x1fc   : > { %v436_v56 = vadd.f32 %v435_v53, %v330_v50  ;;  %v664_v50 = vshrl.u32 %v663_v48, 7 }
 0x1fe   : > { %903 = vtanh.f32 %v436_v56 }
 0x1ff   : > { %905 = vtanh.f32 %v434_v52  ;;  %v665_v52 = vsub.s32 %v662_v49, %v664_v50 }
 0x200   : > { %907 = vtanh.f32 %v430_v55 }
 0x201   : > { %909 = vtanh.f32 %v428_v57 }
 0x202   : > { %911 = vtanh.f32 %v424_v59 }
 0x203   : > { %913 = vtanh.f32 %v422_v60 }
 0x204   : > { %915 = vtanh.f32 %v418_v61 }
 0x205   : > { %917 = vtanh.f32 %v416_v62 }
 0x20b   : > { %v904_v63 = vpop.eup %903 }
 0x20c   : > { %v906_v1 = vpop.eup %905  ;;  %502 = vmatprep.subr.mxu0 %v904_v63 }
 0x20d   : > { %v908_v2 = vpop.eup %907  ;;  %503 = vmatpush1.msra.mxu0 %v906_v1 }
 0x20e   : > { %v910_v3 = vpop.eup %909  ;;  %504 = vmatprep.subr.mxu0 %v908_v2 }
 0x20f   : > { %v912_v4 = vpop.eup %911  ;;  %505 = vmatpush1.msra.mxu0 %v910_v3 }
 0x210   : > { %v914_v5 = vpop.eup %913  ;;  %506 = vmatprep.subr.mxu0 %v912_v4 }
 0x211   : > { %v916_v6 = vpop.eup %915  ;;  %507 = vmatpush1.msra.mxu0 %v914_v5 }
 0x212   : > { %v918_v8 = vpop.eup %917  ;;  %508 = vmatprep.subr.mxu0 %v916_v6 }
 0x213   : > { %509 = vmatpush1.msra.mxu0 %v918_v8 }
 0x214   : > { %796 = vmatmul.mubr.msk.f32.vlgmr.msra.gmra.mxu0 %vm340_vm2, %v463_v7 }
 0x215   : > { %548 = vmatprep.mubr.f32.mxu0 %v1067_v0 }
 0x218   : > { %797 = vmatmul.mubr.msk.f32.gmra.mxu0 %vm340_vm2, %v465_v9 }
 0x219   : > { %554 = vmatprep.mubr.f32.mxu0 %v1067_v0 }
 0x21c   : > { %798 = vmatmul.mubr.msk.f32.gmra.mxu0 %vm340_vm2, %v467_v10 }
 0x21d   : > { %560 = vmatprep.mubr.f32.mxu0 %v1067_v0 }
 0x220   : > { %799 = vmatmul.mubr.msk.f32.gmra.mxu0 %vm340_vm2, %v469_v11 }
 0x2d4   : > { %v544_v13 = vpop.f32.mrf.mxu0 }
 0x2d5   : > { %v545_v31 = vadd.f32 %v544_v13, %v448_v27 }
 0x2d6   : > { %v546_v14 = vpop.f32.mrf.mxu0 }
 0x2d7   : > { %v547_v30 = vadd.f32 %v546_v14, %v448_v27 }
 0x2d8   : > { %v550_v15 = vpop.f32.mrf.mxu0 }
 0x2d9   : > { %v551_v29 = vadd.f32 %v550_v15, %v452_v20 }
 0x2da   : > { %v552_v17 = vpop.f32.mrf.mxu0 }
 0x2db   : > { %v553_v28 = vadd.f32 %v552_v17, %v452_v20 }
 0x2dc   : > { %v556_v18 = vpop.f32.mrf.mxu0 }
 0x2dd   : > { %v557_v26 = vadd.f32 %v556_v18, %v456_v22 }
 0x2de   : > { %v558_v19 = vpop.f32.mrf.mxu0 }
 0x2df   : > { %v559_v25 = vadd.f32 %v558_v19, %v456_v22 }
 0x2e0   : > { %v562_v21 = vpop.f32.mrf.mxu0 }
 0x2e1   : > { %v563_v23 = vadd.f32 %v562_v21, %v460_v16 }
 0x2e2   : > { %v564_v24 = vpop.f32.mrf.mxu0 }
 0x2e3   : > { %v565_v0 = vadd.f32 %v564_v24, %v460_v16 }
 0x2e5   : > { %919 = vtanh.f32 %v565_v0 }
 0x2e6   : > { %921 = vtanh.f32 %v563_v23 }
 0x2e7   : > { %923 = vtanh.f32 %v559_v25 }
 0x2e8   : > { %925 = vtanh.f32 %v557_v26 }
 0x2e9   : > { %927 = vtanh.f32 %v553_v28 }
 0x2ea   : > { %929 = vtanh.f32 %v551_v29 }
 0x2eb   : > { %931 = vtanh.f32 %v547_v30 }
 0x2ec   : > { %933 = vtanh.f32 %v545_v31 }
 0x2f2   : > { %v920_v32 = vpop.eup %919 }
 0x2f3   : > { %v922_v33 = vpop.eup %921  ;;  %608 = vmatprep.subr.mxu1 %v920_v32 }
 0x2f4   : > { %v924_v34 = vpop.eup %923  ;;  %609 = vmatpush1.msra.mxu1 %v922_v33 }
 0x2f5   : > { %v926_v35 = vpop.eup %925  ;;  %610 = vmatprep.subr.mxu1 %v924_v34 }
 0x2f6   : > { %v928_v36 = vpop.eup %927  ;;  %611 = vmatpush1.msra.mxu1 %v926_v35 }
 0x2f7   : > { %v930_v37 = vpop.eup %929  ;;  %612 = vmatprep.subr.mxu1 %v928_v36 }
 0x2f8   : > { %v932_v38 = vpop.eup %931  ;;  %613 = vmatpush1.msra.mxu1 %v930_v37 }
 0x2f9   : > { %v934_v40 = vpop.eup %933  ;;  %614 = vmatprep.subr.mxu1 %v932_v38 }
 0x2fa   : > { %615 = vmatpush1.msra.mxu1 %v934_v40 }
 0x2fb   : > { %800 = vmatmul.mubr.msk.f32.vlgmr.msra.gmra.mxu1 %vm340_vm2, %v581_v39 }
 0x3bb   : > { %v650_v42 = vpop.f32.mrf.mxu1 }
 0x3bc   : > { %v651_v43 = vadd.f32 %v650_v42, %v578_v41 }
 0x3bd   : > { %v652_v44 = vpop.f32.mrf.mxu1 }
 0x3be   : > { %v653_v45 = vadd.f32 %v652_v44, %v578_v41  ;;  %935 = vtanh.f32 %v651_v43 }
 0x3c0   : > { %937 = vtanh.f32 %v653_v45 }
 0x3cb   : > { %v936_v51 = vpop.eup %935 }
 0x3cd   : > { %v938_v53 = vpop.eup %937 }
 0x3ce   : > { %v659_v54 = vcombine.low %v936_v51, %v938_v53 }
 0x3d0   : > { %v666_v55 = vrot.slane %v659_v54, %v665_v52 }
 0x3d2   : > { %v673_v56 = vrot.slane %v666_v55, %v665_v52 }
 0x3d4   : > { %679 = vst.msk [vmem:[%s174_s20] sm:$0x3] %vm677_vm3, %v673_v56 }
 0x3d5   : > { %1006 = shalt.err (!%p1003_p0)
}
 0x3d6   : > { %s1007_s5 = scalar_lea.hbm %s693_s26, 32  ;;  %s1011_s14 = scalar_lea.hbm %s1303_s2, 64 }
 0x3d7   : > { %p1008_p5 = scmp.ne.s32.totalorder %s693_s26, %s1007_s5  ;;  %p1012_p1 = scmp.lt.s32.totalorder %s693_s26, %s1303_s2 }
 0x3d8   : > { %p1013_p4 = scmp.lt.s32.totalorder %s1011_s14, %s1007_s5 }
 0x3d9   : > { %p1009_p9 = pnand %p1008_p5, %p1319_p3 }
 0x3da   : > { %p1014_p6 = por %p1013_p4, %p1012_p1 }
 0x3db   : > { %p1010_p12 = pneg %p1009_p9 }
 0x3dd   : > { %p1015_p8 = pnand %p1014_p6, %p1010_p12 }
 0x3df   : > { %1018 = shalt.err (!%p1015_p8)
}
 0x3e0   : > { %816 = dma.vmem_to_hbm [thread:$0]  (%p1319_p3), %s696_s23, 32, %s693_s26, %s681_s27  }
 0x3e1 PF: > { %s707_s17 = sand.u32 1, %s1049_s9   ;;  %p1320_p11 = scmp.ne.s32.totalorder %s1309_s16, 0 }
 0x3e2   : > { %p1321_p7 = scmp.ge.s32.totalorder %s1061_s12, 2  ;;  %s708_s8 = scalar_lea.sflag [#allocation4], %s707_s17 }
 0x3e4   : > { %p827_p10 = pnand %p1321_p7, %p1320_p11 }
 0x3e6   : > { %p828_p2 = pneg %p827_p10 }
 0x3e8   : > { %1044 = dma.done.wait (%p828_p2), %s708_s8, 32  }
 0x3e9   : > { %1046 = vsyncadd (%p828_p2), %s708_s8, 4294967264  ;;  %p16_p13 = scmp.ge.s32.totalorder %s1146_s21, 4   ;;  %s1322_s9 = smov %s1053_s10 }
 0x3ea   : > { %s1323_s10 = smov %s1057_s11  ;;  %s1324_s11 = smov %s1163_s29 }
 0x3eb   : > { %s1325_s12 = smov %s1146_s21  ;;  %18 = sbr.rel (!%p16_p13) target bundleno = 6 (0x6), region = 77 }
 0x3f0   :  { %713 = vsyncpa [#allocation3], 1 }
 0x3f1   :  { %715 = vsyncpa [#allocation3 + $0x1], 1 }
 0x3f2   :  { %716 = vsyncpa [#allocation6], 1 }
 0x3f3   :  { %717 = vsyncpa [#allocation4], 1 }
 0x3f4   :  { %719 = vsyncpa [#allocation4 + $0x1], 1 }

</bundles_post_ra>
